<compile_context>
chip_gen: v7x
topology: tpu7x:2x2x1
jax: 0.10.0
libtpu: 0.0.40
codegen_flags: <defaults>
</compile_context>

<pallas_src>
import jax
import jax.numpy as jnp
from jax.experimental import pallas as pl
from jax.experimental.pallas import tpu as pltpu


def _addcoords_kernel(x_ref, yy_ref, o_ref):
    # x_ref : (1, C,   T)  input channels, lane-dense spatial tile
    # yy_ref: (1,      T)  precomputed row-coordinate values for this tile
    # o_ref : (1, C+1, T)
    c = x_ref.shape[1]
    t = yy_ref.shape[-1]
    o_ref[:, :c, :] = x_ref[...]
    o_ref[:, c:c + 1, :] = yy_ref[...].reshape(1, 1, t)


def _pick_tile_hw(hw: int, c_out: int, itemsize: int) -> int:
    """Pick a lane-dense spatial tile (multiple of 128 or the full extent)."""
    if hw <= 512:
        # Small spatial extent: single full-width block (always legal).
        return hw
    if hw % 128 != 0:
        # Ragged spatial extent: keep one full-extent block for simplicity.
        return hw
    # Target ~2 MiB for the output block; in+out double-buffered stays
    # comfortably under the 16/32 MiB scoped VMEM defaults (v5e/v6e/v7x).
    target_lanes = (2 * 1024 * 1024) // max(1, c_out * itemsize)
    tile = max(128, (target_lanes // 128) * 128)
    return min(tile, hw)


def add_coords(x):
    """x: (B, C, H, W) float array -> (B, C+1, H, W)."""
    B, C, H, W = x.shape
    HW = H * W
    dtype = x.dtype

    # Lane-dense layout: flatten spatial dims (free, contiguous reshape).
    x_flat = x.reshape(B, C, HW)

    # Precompute the yy plane once (hoisted out of the kernel body).
    yy = jnp.arange(H, dtype=jnp.float32) / jnp.float32(H)          # i / y_dim
    yy_flat = jnp.broadcast_to(yy[:, None], (H, W)).reshape(1, HW).astype(dtype)

    tile = _pick_tile_hw(HW, C + 1, jnp.dtype(dtype).itemsize)
    grid = (B, pl.cdiv(HW, tile))

    out_flat = pl.pallas_call(
        _addcoords_kernel,
        out_shape=jax.ShapeDtypeStruct((B, C + 1, HW), dtype),
        grid_spec=pltpu.PrefetchScalarGridSpec(
            num_scalar_prefetch=0,
            grid=grid,
            in_specs=[
                pl.BlockSpec((1, C, tile), lambda b, s: (b, 0, s)),
                pl.BlockSpec((1, tile), lambda b, s: (0, s)),
            ],
            out_specs=pl.BlockSpec((1, C + 1, tile), lambda b, s: (b, 0, s)),
        ),
        compiler_params=pltpu.CompilerParams(
            dimension_semantics=("parallel", "parallel"),
            vmem_limit_bytes=32 * 1024 * 1024,
        ),
    )(x_flat, yy_flat)

    return out_flat.reshape(B, C + 1, H, W)


def add_coords_ref(x):
    """Pure-JAX reference mirroring the PyTorch AddCoords.forward (with_r=False)."""
    B, C, H, W = x.shape
    yy = (jnp.arange(H, dtype=jnp.float32)[:, None] / H).astype(x.dtype)
    yy = jnp.broadcast_to(yy[None, None, :, :], (B, 1, H, W))
    return jnp.concatenate([x, yy], axis=1)


if __name__ == "__main__":
    key = jax.random.PRNGKey(0)
    B, C, H, W = 2, 4, 16, 16
    x = jax.random.normal(key, (B, C, H, W), dtype=jnp.float32)

    out = add_coords(x)
    out = jax.block_until_ready(out)

    expected = add_coords_ref(x)
    assert out.shape == (B, C + 1, H, W), out.shape
    assert jnp.allclose(out, expected, atol=1e-6), "mismatch vs reference"

    print("KERNEL_OK")
</pallas_src>

<mosaic_0001>
module attributes {stable_mosaic.version = 11 : i64} {
  func.func @_addcoords_kernel(%arg0: i32, %arg1: i32, %arg2: memref<1x4x256xf32, #tpu.memory_space<vmem>>, %arg3: memref<1x256xf32, #tpu.memory_space<vmem>>, %arg4: memref<1x5x256xf32, #tpu.memory_space<vmem>>) attributes {dimension_semantics = [#tpu.dimension_semantics<parallel>, #tpu.dimension_semantics<parallel>], iteration_bounds = array<i64: 2, 1>, scalar_prefetch = 0 : i64, scratch_operands = 0 : i64, tpu.core_type = #tpu.core_type<tc>, window_params = [{transform_indices = @transform_0, window_bounds = array<i64: 1, 4, 256>}, {transform_indices = @transform_1, window_bounds = array<i64: 1, 256>}, {transform_indices = @transform_2, window_bounds = array<i64: 1, 5, 256>}]} {
    %c0 = arith.constant 0 : index
    %c0_0 = arith.constant 0 : index
    %c0_1 = arith.constant 0 : index
    %0 = vector.load %arg2[%c0, %c0_0, %c0_1] : memref<1x4x256xf32, #tpu.memory_space<vmem>>, vector<1x4x256xf32>
    %c0_2 = arith.constant 0 : index
    %c0_3 = arith.constant 0 : index
    %c0_4 = arith.constant 0 : index
    %1 = vector.load %arg4[%c0_2, %c0_3, %c0_4] : memref<1x5x256xf32, #tpu.memory_space<vmem>>, vector<1x4x256xf32>
    tpu.vector_store %arg4[%c0_2, %c0_3, %c0_4], %0 {strides = array<i32>} : memref<1x5x256xf32, #tpu.memory_space<vmem>>, vector<1x4x256xf32>,
    %c0_5 = arith.constant 0 : index
    %c0_6 = arith.constant 0 : index
    %2 = vector.load %arg3[%c0_5, %c0_6] : memref<1x256xf32, #tpu.memory_space<vmem>>, vector<1x256xf32>
    %3 = vector.shape_cast %2 : vector<1x256xf32> to vector<1x1x256xf32>
    %c0_7 = arith.constant 0 : index
    %c4 = arith.constant 4 : index
    %c0_8 = arith.constant 0 : index
    %4 = vector.load %arg4[%c0_7, %c4, %c0_8] : memref<1x5x256xf32, #tpu.memory_space<vmem>>, vector<1x1x256xf32>
    tpu.vector_store %arg4[%c0_7, %c4, %c0_8], %3 {strides = array<i32>} : memref<1x5x256xf32, #tpu.memory_space<vmem>>, vector<1x1x256xf32>,
    return
  }
  func.func @transform_0(%arg0: i32, %arg1: i32) -> (i32, i32, i32) {
    %c0_i32 = arith.constant 0 : i32
    %c0_i32_0 = arith.constant 0 : i32
    return %arg0, %c0_i32, %arg1 : i32, i32, i32
  }
  func.func @transform_1(%arg0: i32, %arg1: i32) -> (i32, i32) {
    %c0_i32 = arith.constant 0 : i32
    %c0_i32_0 = arith.constant 0 : i32
    return %c0_i32, %arg1 : i32, i32
  }
  func.func @transform_2(%arg0: i32, %arg1: i32) -> (i32, i32, i32) {
    %c0_i32 = arith.constant 0 : i32
    %c0_i32_0 = arith.constant 0 : i32
    return %arg0, %c0_i32, %arg1 : i32, i32, i32
  }
}

</mosaic_0001>

<bundles_post_ra>
// kernel: tpu_custom_call.1
= control target key start
LH: loop header
LB: loop body
LE: loop exit
PB: predicated region body
PF: predicated region fallthrough
CT: control target
= control target key end

     0   :  { %7 = vsyncpa [#allocation3], 0  ;;  %s629_s0 = inlined_call_operand.hbm [shape: f32[2,4,256], index: 0, kind: input, shape index: {}]   ;;  %s630_s1 = inlined_call_operand.vmem [shape: f32[1,256], index: 1, kind: input, shape index: {}]   ;;  %s631_s2 = inlined_call_operand.vmem [shape: f32[2,5,256], index: 2, kind: output, shape index: {}]  }
   0x1   :  { %9 = vsyncpa [#allocation3 + $0x1], 0  ;;  %s501_s9 = smov 0   ;;  %s503_s10 = smov 0  }
   0x2   :  { %s505_s11 = smov 0   ;;  %s507_s12 = smov 0  }
   0x3   :  { %s509_s13 = smov 0   ;;  %s511_s14 = smov 0  }
   0x4 LB: > { %s330_s15 = sadd.s32 4294967295, %s483_s14   ;;  %s27_s16 = sadd.s32 1, %s479_s13  ;;  %s483_s14 = sphi %s511_s14, %s15_s14   ;;  %s479_s13 = sphi %s509_s13, %s641_s13   ;;  %s475_s12 = sphi %s507_s12, %s640_s12   ;;  %s471_s11 = sphi %s505_s11, %s639_s11   ;;  %s467_s10 = sphi %s503_s10, %s638_s10   ;;  %s463_s9 = sphi %s501_s9, %s637_s9  }
   0x5   : > { %p29_p0 = scmp.ge.s32.totalorder %s27_s16, 2  ;;  %s36_s17 = sadd.s32 1, %s471_s11 }
   0x6   : > { %p43_p1 = scmp.ne.s32.totalorder %s471_s11, %s467_s10  ;;  %p44_p2 = scmp.eq.s32.totalorder %s483_s14, 0 }
   0x7   : > { %s643_s16 = smov (%p29_p0, %s27_s16), 0  ;;  %p49_p4 = scmp.ne.s32.totalorder %s467_s10, %s463_s9 }
   0x8   : > { %p537_p3 = por %p44_p2, %p43_p1  ;;  %s31_s19 = ssub.s32 %s479_s13, %s643_s16 }
   0x9   : > { %p50_p5 = scmp.eq.s32.totalorder %s330_s15, 0  ;;  %p34_p6 = scmp.eq.s32.totalorder %s31_s19, 0 }
   0xa   : > { %p353_p8 = scmp.lt.s32.totalorder %s483_s14, 2  ;;  %s135_s22 = sand.u32 1, %s471_s11  }
   0xb   : > { %p544_p7 = por %p50_p5, %p49_p4  ;;  %s345_s23 = sshll.u32 %s479_s13, 7 }
   0xc   : > { %s550_s21 = scalar_select %p34_p6, %s471_s11, %s36_s17  }
   0xd   : > { %s335_s24 = sshll.u32 %s135_s22, 3  ;;  %s557_s27 = scalar_lea.hbm %s629_s0, %s345_s23 }
   0xe   : > { %s139_s28 = scalar_lea.vmem [#allocation2], %s335_s24  ;;  %p561_p9 = pnand %p353_p8, %p537_p3 }
   0xf   : > { %s149_s29 = sshll.u32 %s139_s28, 4  ;;  %s136_s3 = scalar_lea.sflag [#allocation3], %s135_s22  ;;  %s565_s29 = int_to_ptr.vmem [resolvable:$true] %s149_s29 }
  0x10   : > { %s403_s4 = scalar_lea.hbm %s557_s27, 128  ;;  %p405_p13 = pneg %p561_p9 }
  0x11   : > { %p404_p12 = scmp.ne.s32.totalorder %s557_s27, %s403_s4  ;;  %s408_s7 = scalar_lea.hbm %s629_s0, 256 }
  0x12   : > { %p409_p2 = scmp.lt.u32.totalorder %s557_s27, %s629_s0  ;;  %p410_p3 = scmp.lt.u32.totalorder %s408_s7, %s403_s4 }
  0x13   : > { %p406_p0 = pnand %p405_p13, %p404_p12  ;;  %p412_p5 = scmp.lt.u32.totalorder %s403_s4, %s557_s27 }
  0x14   : > { %p411_p4 = por %p410_p3, %p409_p2 }
  0x15   : > { %p407_p1 = pneg %p406_p0 }
  0x16   : > { %p413_p6 = por %p412_p5, %p411_p4 }
  0x18   : > { %p414_p8 = pnand %p413_p6, %p407_p1 }
  0x1a   : > { %417 = shalt.err (!%p414_p8)
}
  0x1b   : > { %s418_s15 = scalar_lea.vmem %s565_s29, 128  ;;  %s485_s17 = smov [#allocation2]  }
  0x1c   : > { %p419_p12 = scmp.ne.s32.totalorder %s565_s29, %s418_s15  ;;  %s423_s18 = sshll.u32 %s485_s17, 4  ;;  %s424_s18 = int_to_ptr.vmem [resolvable:$false] %s423_s18 }
  0x1d   : > { %s425_s19 = scalar_lea.vmem %s424_s18, 256  ;;  %p426_p11 = scmp.lt.s32.totalorder %s565_s29, %s424_s18 }
  0x1e   : > { %p421_p0 = pnand %p419_p12, %p405_p13  ;;  %p427_p2 = scmp.lt.s32.totalorder %s425_s19, %s418_s15 }
  0x20   : > { %p422_p10 = pneg %p421_p0  ;;  %p428_p3 = por %p427_p2, %p426_p11 }
  0x22   : > { %p429_p4 = pnand %p428_p3, %p422_p10 }
  0x24   : > { %432 = shalt.err (!%p429_p4)
}
  0x25   : > { %352 = dma.hbm_to_vmem [thread:$0]  (!%p561_p9), %s557_s27, 128, %s565_s29, %s136_s3  }
  0x26   : > { %p635_p1 = scmp.lt.s32.totalorder %s483_s14, 3  ;;  %p636_p5 = scmp.ge.s32.totalorder %s483_s14, 1 }
  0x28   : > { %p155_p13 = pnand %p636_p5, %p635_p1 }
  0x29   : > { %s160_s22 = sand.u32 (!%p155_p13), 1, %s467_s10  }
  0x2a   : > { %158 = sbr.rel (%p155_p13) target bundleno = 57 (0x39), region = 28  ;;  %s339_s23 = sshll.u32 (!%p155_p13), %s160_s22, 3 }
  0x2b   : > { %s161_s24 = scalar_lea.sflag (!%p155_p13), [#allocation3], %s160_s22  ;;  %s164_s25 = scalar_lea.vmem (!%p155_p13), [#allocation2], %s339_s23 }
  0x31   : > { %458 = dma.done.wait (%p544_p7), %s161_s24, 128  }
  0x32   : > { %460 = vsyncadd (%p544_p7), %s161_s24, 4294967168  ;;  %p200_p10 = scmp.lt.s32.totalorder %s475_s12, 1  ;;  %v216_v0 = vlaneseq  ;;  %v209_v1 = vld [vmem:[%s164_s25] sm:$0xff] }
  0x33   : > { %v215_v2 = vld [vmem:[%s630_s1] sm:$0x3]  ;;  %v211_v3 = vcombine.high %v209_v1, %v209_v1 }
  0x34   : > { %s645_s12 = smov (!%p200_p10, %s475_s12), 1  ;;  %vm218_vm0 = vcmp.lt.s32.totalorder %v216_v0, 256 }
  0x35   : > { %s346_s26 = sshll.u32 %s645_s12, 4 }
  0x36   : > { %s207_s29 = scalar_lea.vmem %s631_s2, %s346_s26 }
  0x37   : > { %213 = vst [vmem:[%s207_s29] sm:$0xf] %v209_v1  ;;  %342 = vst.msk [vmem:[%s207_s29 + $0x4] ss:$8 sm:$0x3] %vm218_vm0, %v215_v2 }
  0x38   : > { %214 = vst [vmem:[%s207_s29 + $0x8] sm:$0xf] %v211_v3 }
  0x39 PF: > { %s15_s14 = sadd.s32 1, %s483_s14   ;;  %s637_s9 = smov %s467_s10 }
  0x3a   : > { %p12_p7 = scmp.ge.s32.totalorder %s15_s14, 4   ;;  %s638_s10 = smov %s471_s11 }
  0x3b   : > { %s639_s11 = smov %s550_s21  ;;  %s640_s12 = smov %s479_s13 }
  0x3c   : > { %s641_s13 = smov %s643_s16  ;;  %14 = sbr.rel (!%p12_p7) target bundleno = 4 (0x4), region = 72 }
  0x43   :  { %253 = vsyncpa [#allocation3], 1 }
  0x44   :  { %255 = vsyncpa [#allocation3 + $0x1], 1 }

</bundles_post_ra>
